<compile_context>
chip_gen: v5e
topology: v5e:2x2
jax: 0.10.0
libtpu: 0.0.40
codegen_flags: <defaults>
</compile_context>

<pallas_src>
import functools

import jax
import jax.numpy as jnp
from jax.experimental import pallas as pl
from jax.experimental.pallas import tpu as pltpu


def _gcn_pool_kernel(a_ref, h_ref, sel_ref, invc_ref, w_ref, b_ref, out_ref,
                     a_bd_ref, *, num_layers, graphs_per_step, nodes_per_graph):
    """One grid step == `graphs_per_step` graphs packed block-diagonally.

    a_ref    : (1, GN, N)  bf16  compact adjacency "stripe": rows g*N+i hold graph g's row i
    h_ref    : (1, GN, HP) bf16  summed node embeddings (hid padded to HP)
    sel_ref  : (1, G, GN)  bf16  pooling selector (1 where flat node n is a valid node of graph g)
    invc_ref : (1, G, 1)   f32   1 / max(valid node count, 1) per graph
    w_ref    : (L, HP, HP) bf16  stacked GraphConv weights (zero padded), VMEM resident
    b_ref    : (L, 1, HP)  f32   stacked GraphConv biases (zero padded), VMEM resident
    out_ref  : (1, G, HP)  f32   per-graph mean pooled node features
    a_bd_ref : (GN, GN)    bf16  VMEM scratch: block-diagonal adjacency for this step
    """
    G = graphs_per_step
    N = nodes_per_graph

    # Build block-diagonal D^-1/2 A D^-1/2 in VMEM from the compact stripe.
    # Full zero each step (cheap: GN*GN bf16 stores) keeps this correct under a
    # megacore "parallel" grid split: each core has its own scratch and only one
    # of them would ever see program_id(0) == 0.
    a_bd_ref[...] = jnp.zeros_like(a_bd_ref)
    for g in range(G):  # static offsets -> plain slices
        a_bd_ref[g * N:(g + 1) * N, g * N:(g + 1) * N] = a_ref[0, g * N:(g + 1) * N, :]

    A = a_bd_ref[...]          # [GN, GN] bf16
    H = h_ref[0]               # [GN, HP] bf16

    # GraphConv layers: H <- relu(A_hat @ H @ W_l + b_l).  bf16 operands on the
    # MXU, f32 accumulation / bias / relu.  (Static unroll: num_layers is small;
    # switch to lax.fori_loop(..., unroll=True) if it grows beyond ~4.)
    for l in range(num_layers):
        AH = jnp.dot(A, H, preferred_element_type=jnp.float32)            # [GN, HP]
        HW = jnp.dot(AH.astype(jnp.bfloat16), w_ref[l],
                     preferred_element_type=jnp.float32)                   # [GN, HP]
        H = jnp.maximum(HW + b_ref[l], 0.0).astype(jnp.bfloat16)

    # AvgPooling as a selector matmul on the MXU; selector / reciprocal counts
    # come precomputed from the wrapper.
    pooled_sum = jnp.dot(sel_ref[0], H, preferred_element_type=jnp.float32)  # [G, HP]
    out_ref[0] = pooled_sum * invc_ref[0]


def atc_gcn_forward(a_norm, hv, counts, w_layers, b_layers, w_out, b_out):
    """Default ATC_GCN forward path.

    a_norm : [B, N, N] f32   per-graph normalized adjacency D^-1/2 A D^-1/2
    hv     : [B, N, HID] f32 summed node embeddings
    counts : [B] int32       number of valid nodes per graph (<= N)
    """
    B, N, _ = a_norm.shape
    HID = hv.shape[-1]
    L = w_layers.shape[0]

    # Graphs packed per grid step:
    #   * target GN = G*N ~ 256 so A@H / AH@W present 256-row tiles to the
    #     256x256 MXU (v6e/v7x); 128 rows would only half-fill it;
    #   * keep >= 2 grid steps when the batch allows, so ("parallel",) can shard
    #     the grid across both v7x TensorCores;
    #   * keep G a multiple of 8 so the (1, G, HP) f32 output stores sublane-dense.
    g_target = -(-256 // N)
    g_cap = max(1, -(-B // 2))
    G = max(8, min(g_target, g_cap))
    G = -(-G // 8) * 8
    B_pad = -(-B // G) * G
    P = B_pad // G                                   # grid steps
    GN = G * N
    HP = -(-HID // 128) * 128                        # lane-dense hidden dim

    pad_b = B_pad - B
    # Cast to bf16 *before* padding / reshaping so wrapper-side glue moves half the bytes.
    a_p = jnp.pad(a_norm.astype(jnp.bfloat16), ((0, pad_b), (0, 0), (0, 0)))
    hv_p = jnp.pad(hv.astype(jnp.bfloat16), ((0, pad_b), (0, 0), (0, HP - HID)))
    counts_p = jnp.pad(counts.astype(jnp.int32), ((0, pad_b),))

    # Compact per-group adjacency "stripe" [P, GN, N] (pure reshape, no blow-up);
    # the [GN, GN] block-diagonal tile is built inside the kernel.
    a_stripe = a_p.reshape(P, GN, N)
    hv_grp = hv_p.reshape(P, GN, HP)

    w_p = jnp.pad(w_layers, ((0, 0), (0, HP - HID), (0, HP - HID))).astype(jnp.bfloat16)
    b_p = jnp.pad(b_layers, ((0, 0), (0, 0), (0, HP - HID))).astype(jnp.float32)

    # Pooling selector (0/1) and reciprocal counts, precomputed once here instead
    # of being rebuilt from scalar-prefetched counts every grid step.
    counts_grp = counts_p.reshape(P, G)
    node_graph = (jnp.arange(GN, dtype=jnp.int32) // N)[None, None, :]
    node_local = (jnp.arange(GN, dtype=jnp.int32) % N)[None, None, :]
    graph_ids = jnp.arange(G, dtype=jnp.int32)[None, :, None]
    sel = ((node_graph == graph_ids)
           & (node_local < counts_grp[:, :, None])).astype(jnp.bfloat16)       # [P, G, GN]
    inv_cnt = (1.0 / jnp.maximum(counts_grp, 1).astype(jnp.float32))[:, :, None]  # [P, G, 1]

    kernel = functools.partial(
        _gcn_pool_kernel, num_layers=L, graphs_per_step=G, nodes_per_graph=N)

    def _nbytes(x):
        return x.size * x.dtype.itemsize

    flops = 2 * P * (L * (GN * GN * HP + GN * HP * HP) + G * GN * HP)
    bytes_accessed = (_nbytes(a_stripe) + _nbytes(hv_grp) + _nbytes(sel)
                      + _nbytes(inv_cnt) + _nbytes(w_p) + _nbytes(b_p)
                      + P * G * HP * 4)

    # Explicit VMEM budget: double-buffered per-step inputs/outputs + resident
    # weights + block-diagonal scratch, 2x headroom, capped for v7x's 64 MiB VMEM.
    per_step_in = (_nbytes(a_stripe) + _nbytes(hv_grp) + _nbytes(sel)
                   + _nbytes(inv_cnt)) // P
    vmem_need = (2 * (per_step_in + G * HP * 4) + _nbytes(w_p) + _nbytes(b_p)
                 + GN * GN * 2)
    vmem_limit = int(min(max(2 * vmem_need, 32 * 1024 * 1024), 64 * 1024 * 1024))

    pooled = pl.pallas_call(
        kernel,
        out_shape=jax.ShapeDtypeStruct((P, G, HP), jnp.float32),
        grid_spec=pltpu.PrefetchScalarGridSpec(
            num_scalar_prefetch=0,
            grid=(P,),
            in_specs=[
                pl.BlockSpec((1, GN, N), lambda p: (p, 0, 0)),
                pl.BlockSpec((1, GN, HP), lambda p: (p, 0, 0)),
                pl.BlockSpec((1, G, GN), lambda p: (p, 0, 0)),
                pl.BlockSpec((1, G, 1), lambda p: (p, 0, 0)),
                # Constant block index -> fetched once, resident across grid steps.
                pl.BlockSpec((L, HP, HP), lambda p: (0, 0, 0)),
                pl.BlockSpec((L, 1, HP), lambda p: (0, 0, 0)),
            ],
            out_specs=pl.BlockSpec((1, G, HP), lambda p: (p, 0, 0)),
            scratch_shapes=[pltpu.VMEM((GN, GN), jnp.bfloat16)],
        ),
        compiler_params=pltpu.CompilerParams(
            dimension_semantics=("parallel",),
            vmem_limit_bytes=vmem_limit),
        cost_estimate=pl.CostEstimate(
            flops=flops, transcendentals=0, bytes_accessed=bytes_accessed),
    )(a_stripe, hv_grp, sel, inv_cnt, w_p, b_p)

    # Output Linear: one well-shaped matmul in XLA instead of a [1, hid] x [hid, out]
    # sliver (and a lane-sparse store) per grid step.
    pooled = pooled.reshape(B_pad, HP)[:B, :HID]
    return pooled @ w_out + b_out


def _reference_forward(a_norm, hv, counts, w_layers, b_layers, w_out, b_out):
    """Pure-JAX f32 reference of the same math (for a sanity check)."""
    H = hv
    for l in range(w_layers.shape[0]):
        H = jax.nn.relu(
            jnp.einsum("bij,bjh->bih", a_norm, H) @ w_layers[l] + b_layers[l])
    N = hv.shape[1]
    mask = (jnp.arange(N)[None, :, None] < counts[:, None, None]).astype(jnp.float32)
    pooled = jnp.sum(H * mask, axis=1) / jnp.maximum(counts, 1).astype(jnp.float32)[:, None]
    return pooled @ w_out + b_out


if __name__ == "__main__":
    # Small, forward-consistent shapes.  B=16, N=16 -> G=8 graphs per step,
    # GN=128, grid of 2 steps (keeps both v7x TensorCores busy at this tiny B;
    # larger batches automatically pack GN up to ~256).
    B = 16           # number of graphs in the DGL batch
    N = 16           # nodes per graph
    HID = 32         # hid_dim
    OUT = 8          # out_dim
    L = 2            # num_layers
    NUM_NODE_EMB = (10, 5)   # num_node_emb_list

    key = jax.random.PRNGKey(0)
    keys = jax.random.split(key, 8)

    # ---- deterministic parameters (shapes from __init__) ----
    emb_tables = [
        0.1 * jax.random.normal(keys[0], (NUM_NODE_EMB[0], HID), jnp.float32),
        0.1 * jax.random.normal(keys[1], (NUM_NODE_EMB[1], HID), jnp.float32),
    ]
    w_layers = 0.2 * jax.random.normal(keys[2], (L, HID, HID), jnp.float32)
    b_layers = 0.05 * jax.random.normal(keys[3], (L, 1, HID), jnp.float32)
    w_out = 0.2 * jax.random.normal(keys[4], (HID, OUT), jnp.float32)
    b_out = 0.05 * jax.random.normal(keys[5], (1, OUT), jnp.float32)

    # ---- deterministic graph batch: ring graph per graph + a few extra edges ----
    idx = jnp.arange(N)
    ring = jnp.zeros((N, N), jnp.float32)
    ring = ring.at[idx, (idx + 1) % N].set(1.0)
    ring = ring.at[(idx + 1) % N, idx].set(1.0)
    extra = (jax.random.uniform(keys[6], (B, N, N)) < 0.1).astype(jnp.float32)
    extra = jnp.triu(extra, 1)
    A = jnp.clip(ring[None] + extra + jnp.swapaxes(extra, 1, 2), 0.0, 1.0)

    # GraphConv norm='both': A_hat = D^{-1/2} A D^{-1/2} (degrees clamped to >= 1)
    deg = jnp.clip(jnp.sum(A, axis=-1), 1.0, None)
    d_inv_sqrt = 1.0 / jnp.sqrt(deg)
    a_norm = A * d_inv_sqrt[:, :, None] * d_inv_sqrt[:, None, :]

    # ---- categorical node features -> summed embeddings (glue gather) ----
    feats0 = jax.random.randint(keys[7], (B, N), 0, NUM_NODE_EMB[0])
    feats1 = jax.random.randint(jax.random.fold_in(keys[7], 1),
                                (B, N), 0, NUM_NODE_EMB[1])
    hv = emb_tables[0][feats0] + emb_tables[1][feats1]          # [B, N, HID]

    counts = jnp.full((B,), N, jnp.int32)                       # all nodes valid

    out = atc_gcn_forward(a_norm, hv, counts, w_layers, b_layers, w_out, b_out)
    out = jax.block_until_ready(out)

    ref = _reference_forward(a_norm, hv, counts, w_layers, b_layers, w_out, b_out)
    assert out.shape == (B, OUT)
    assert jnp.allclose(out, ref, rtol=2e-2, atol=2e-2), \
        float(jnp.max(jnp.abs(out - ref)))

    print("KERNEL_OK")
</pallas_src>

<mosaic_0001>
module attributes {stable_mosaic.version = 11 : i64} {
  func.func @_gcn_pool_kernel(%arg0: i32, %arg1: memref<1x128x16xbf16, #tpu.memory_space<vmem>>, %arg2: memref<1x128x128xbf16, #tpu.memory_space<vmem>>, %arg3: memref<1x8x128xbf16, #tpu.memory_space<vmem>>, %arg4: memref<1x8x1xf32, #tpu.memory_space<vmem>>, %arg5: memref<2x128x128xbf16, #tpu.memory_space<vmem>>, %arg6: memref<2x1x128xf32, #tpu.memory_space<vmem>>, %arg7: memref<1x8x128xf32, #tpu.memory_space<vmem>>, %arg8: memref<128x128xbf16, #tpu.memory_space<vmem>>) attributes {dimension_semantics = [#tpu.dimension_semantics<parallel>], iteration_bounds = array<i64: 2>, scalar_prefetch = 0 : i64, scratch_operands = 1 : i64, tpu.core_type = #tpu.core_type<tc>, window_params = [{transform_indices = @transform_0, window_bounds = array<i64: 1, 128, 16>}, {transform_indices = @transform_1, window_bounds = array<i64: 1, 128, 128>}, {transform_indices = @transform_2, window_bounds = array<i64: 1, 8, 128>}, {transform_indices = @transform_3, window_bounds = array<i64: 1, 8, 1>}, {pipeline_mode = #tpu.pipeline_mode<synchronous>, transform_indices = @transform_4, window_bounds = array<i64: 2, 128, 128>}, {pipeline_mode = #tpu.pipeline_mode<synchronous>, transform_indices = @transform_5, window_bounds = array<i64: 2, 1, 128>}, {transform_indices = @transform_6, window_bounds = array<i64: 1, 8, 128>}]} {
    %cst = arith.constant 0.000000e+00 : bf16
    %0 = vector.broadcast %cst : bf16 to vector<128x128xbf16>
    %c0 = arith.constant 0 : index
    %c0_0 = arith.constant 0 : index
    %1 = vector.load %arg8[%c0, %c0_0] : memref<128x128xbf16, #tpu.memory_space<vmem>>, vector<128x128xbf16>
    tpu.vector_store %arg8[%c0, %c0_0], %0 {strides = array<i32>} : memref<128x128xbf16, #tpu.memory_space<vmem>>, vector<128x128xbf16>,
    %c0_1 = arith.constant 0 : index
    %c0_2 = arith.constant 0 : index
    %c0_3 = arith.constant 0 : index
    %2 = vector.load %arg1[%c0_1, %c0_2, %c0_3] : memref<1x128x16xbf16, #tpu.memory_space<vmem>>, vector<1x16x16xbf16>
    %3 = vector.shape_cast %2 : vector<1x16x16xbf16> to vector<16x16xbf16>
    %c0_4 = arith.constant 0 : index
    %c0_5 = arith.constant 0 : index
    %4 = vector.load %arg8[%c0_4, %c0_5] : memref<128x128xbf16, #tpu.memory_space<vmem>>, vector<16x16xbf16>
    tpu.vector_store %arg8[%c0_4, %c0_5], %3 {strides = array<i32>} : memref<128x128xbf16, #tpu.memory_space<vmem>>, vector<16x16xbf16>,
    %c0_6 = arith.constant 0 : index
    %c16 = arith.constant 16 : index
    %c0_7 = arith.constant 0 : index
    %5 = vector.load %arg1[%c0_6, %c16, %c0_7] : memref<1x128x16xbf16, #tpu.memory_space<vmem>>, vector<1x16x16xbf16>
    %6 = vector.shape_cast %5 : vector<1x16x16xbf16> to vector<16x16xbf16>
    %c16_8 = arith.constant 16 : index
    %c16_9 = arith.constant 16 : index
    %7 = vector.load %arg8[%c16_8, %c16_9] : memref<128x128xbf16, #tpu.memory_space<vmem>>, vector<16x16xbf16>
    tpu.vector_store %arg8[%c16_8, %c16_9], %6 {strides = array<i32>} : memref<128x128xbf16, #tpu.memory_space<vmem>>, vector<16x16xbf16>,
    %c0_10 = arith.constant 0 : index
    %c32 = arith.constant 32 : index
    %c0_11 = arith.constant 0 : index
    %8 = vector.load %arg1[%c0_10, %c32, %c0_11] : memref<1x128x16xbf16, #tpu.memory_space<vmem>>, vector<1x16x16xbf16>
    %9 = vector.shape_cast %8 : vector<1x16x16xbf16> to vector<16x16xbf16>
    %c32_12 = arith.constant 32 : index
    %c32_13 = arith.constant 32 : index
    %10 = vector.load %arg8[%c32_12, %c32_13] : memref<128x128xbf16, #tpu.memory_space<vmem>>, vector<16x16xbf16>
    tpu.vector_store %arg8[%c32_12, %c32_13], %9 {strides = array<i32>} : memref<128x128xbf16, #tpu.memory_space<vmem>>, vector<16x16xbf16>,
    %c0_14 = arith.constant 0 : index
    %c48 = arith.constant 48 : index
    %c0_15 = arith.constant 0 : index
    %11 = vector.load %arg1[%c0_14, %c48, %c0_15] : memref<1x128x16xbf16, #tpu.memory_space<vmem>>, vector<1x16x16xbf16>
    %12 = vector.shape_cast %11 : vector<1x16x16xbf16> to vector<16x16xbf16>
    %c48_16 = arith.constant 48 : index
    %c48_17 = arith.constant 48 : index
    %13 = vector.load %arg8[%c48_16, %c48_17] : memref<128x128xbf16, #tpu.memory_space<vmem>>, vector<16x16xbf16>
    tpu.vector_store %arg8[%c48_16, %c48_17], %12 {strides = array<i32>} : memref<128x128xbf16, #tpu.memory_space<vmem>>, vector<16x16xbf16>,
    %c0_18 = arith.constant 0 : index
    %c64 = arith.constant 64 : index
    %c0_19 = arith.constant 0 : index
    %14 = vector.load %arg1[%c0_18, %c64, %c0_19] : memref<1x128x16xbf16, #tpu.memory_space<vmem>>, vector<1x16x16xbf16>
    %15 = vector.shape_cast %14 : vector<1x16x16xbf16> to vector<16x16xbf16>
    %c64_20 = arith.constant 64 : index
    %c64_21 = arith.constant 64 : index
    %16 = vector.load %arg8[%c64_20, %c64_21] : memref<128x128xbf16, #tpu.memory_space<vmem>>, vector<16x16xbf16>
    tpu.vector_store %arg8[%c64_20, %c64_21], %15 {strides = array<i32>} : memref<128x128xbf16, #tpu.memory_space<vmem>>, vector<16x16xbf16>,
    %c0_22 = arith.constant 0 : index
    %c80 = arith.constant 80 : index
    %c0_23 = arith.constant 0 : index
    %17 = vector.load %arg1[%c0_22, %c80, %c0_23] : memref<1x128x16xbf16, #tpu.memory_space<vmem>>, vector<1x16x16xbf16>
    %18 = vector.shape_cast %17 : vector<1x16x16xbf16> to vector<16x16xbf16>
    %c80_24 = arith.constant 80 : index
    %c80_25 = arith.constant 80 : index
    %19 = vector.load %arg8[%c80_24, %c80_25] : memref<128x128xbf16, #tpu.memory_space<vmem>>, vector<16x16xbf16>
    tpu.vector_store %arg8[%c80_24, %c80_25], %18 {strides = array<i32>} : memref<128x128xbf16, #tpu.memory_space<vmem>>, vector<16x16xbf16>,
    %c0_26 = arith.constant 0 : index
    %c96 = arith.constant 96 : index
    %c0_27 = arith.constant 0 : index
    %20 = vector.load %arg1[%c0_26, %c96, %c0_27] : memref<1x128x16xbf16, #tpu.memory_space<vmem>>, vector<1x16x16xbf16>
    %21 = vector.shape_cast %20 : vector<1x16x16xbf16> to vector<16x16xbf16>
    %c96_28 = arith.constant 96 : index
    %c96_29 = arith.constant 96 : index
    %22 = vector.load %arg8[%c96_28, %c96_29] : memref<128x128xbf16, #tpu.memory_space<vmem>>, vector<16x16xbf16>
    tpu.vector_store %arg8[%c96_28, %c96_29], %21 {strides = array<i32>} : memref<128x128xbf16, #tpu.memory_space<vmem>>, vector<16x16xbf16>,
    %c0_30 = arith.constant 0 : index
    %c112 = arith.constant 112 : index
    %c0_31 = arith.constant 0 : index
    %23 = vector.load %arg1[%c0_30, %c112, %c0_31] : memref<1x128x16xbf16, #tpu.memory_space<vmem>>, vector<1x16x16xbf16>
    %24 = vector.shape_cast %23 : vector<1x16x16xbf16> to vector<16x16xbf16>
    %c112_32 = arith.constant 112 : index
    %c112_33 = arith.constant 112 : index
    %25 = vector.load %arg8[%c112_32, %c112_33] : memref<128x128xbf16, #tpu.memory_space<vmem>>, vector<16x16xbf16>
    tpu.vector_store %arg8[%c112_32, %c112_33], %24 {strides = array<i32>} : memref<128x128xbf16, #tpu.memory_space<vmem>>, vector<16x16xbf16>,
    %c0_34 = arith.constant 0 : index
    %c0_35 = arith.constant 0 : index
    %26 = vector.load %arg8[%c0_34, %c0_35] : memref<128x128xbf16, #tpu.memory_space<vmem>>, vector<128x128xbf16>
    %c0_36 = arith.constant 0 : index
    %c0_37 = arith.constant 0 : index
    %c0_38 = arith.constant 0 : index
    %27 = vector.load %arg2[%c0_36, %c0_37, %c0_38] : memref<1x128x128xbf16, #tpu.memory_space<vmem>>, vector<1x128x128xbf16>
    %28 = vector.shape_cast %27 : vector<1x128x128xbf16> to vector<128x128xbf16>
    %cst_39 = arith.constant dense<0.000000e+00> : vector<128x128xf32>
    %29 = tpu.matmul %26, %28, %cst_39 {dimension_numbers = #tpu.dot_dimension_numbers<[1], [0], [0], [1], [0, 0, 1, 1], [], []>} : vector<128x128xbf16>, vector<128x128xbf16>, vector<128x128xf32> -> vector<128x128xf32>
    %30 = arith.truncf %29 : vector<128x128xf32> to vector<128x128xbf16>
    %c0_40 = arith.constant 0 : index
    %c0_41 = arith.constant 0 : index
    %c0_42 = arith.constant 0 : index
    %31 = vector.load %arg5[%c0_40, %c0_41, %c0_42] : memref<2x128x128xbf16, #tpu.memory_space<vmem>>, vector<1x128x128xbf16>
    %32 = vector.shape_cast %31 : vector<1x128x128xbf16> to vector<128x128xbf16>
    %cst_43 = arith.constant dense<0.000000e+00> : vector<128x128xf32>
    %33 = tpu.matmul %30, %32, %cst_43 {dimension_numbers = #tpu.dot_dimension_numbers<[1], [0], [0], [1], [0, 0, 1, 1], [], []>} : vector<128x128xbf16>, vector<128x128xbf16>, vector<128x128xf32> -> vector<128x128xf32>
    %c0_44 = arith.constant 0 : index
    %c0_45 = arith.constant 0 : index
    %c0_46 = arith.constant 0 : index
    %34 = vector.load %arg6[%c0_44, %c0_45, %c0_46] : memref<2x1x128xf32, #tpu.memory_space<vmem>>, vector<1x1x128xf32>
    %35 = vector.shape_cast %34 : vector<1x1x128xf32> to vector<1x128xf32>
    %36 = vector.broadcast %35 : vector<1x128xf32> to vector<128x128xf32>
    %37 = arith.addf %33, %36 : vector<128x128xf32>
    %cst_47 = arith.constant 0.000000e+00 : f32
    %38 = vector.broadcast %cst_47 : f32 to vector<128x128xf32>
    %39 = arith.maximumf %37, %38 : vector<128x128xf32>
    %40 = arith.truncf %39 : vector<128x128xf32> to vector<128x128xbf16>
    %cst_48 = arith.constant dense<0.000000e+00> : vector<128x128xf32>
    %41 = tpu.matmul %26, %40, %cst_48 {dimension_numbers = #tpu.dot_dimension_numbers<[1], [0], [0], [1], [0, 0, 1, 1], [], []>} : vector<128x128xbf16>, vector<128x128xbf16>, vector<128x128xf32> -> vector<128x128xf32>
    %42 = arith.truncf %41 : vector<128x128xf32> to vector<128x128xbf16>
    %c1 = arith.constant 1 : index
    %c0_49 = arith.constant 0 : index
    %c0_50 = arith.constant 0 : index
    %43 = vector.load %arg5[%c1, %c0_49, %c0_50] : memref<2x128x128xbf16, #tpu.memory_space<vmem>>, vector<1x128x128xbf16>
    %44 = vector.shape_cast %43 : vector<1x128x128xbf16> to vector<128x128xbf16>
    %cst_51 = arith.constant dense<0.000000e+00> : vector<128x128xf32>
    %45 = tpu.matmul %42, %44, %cst_51 {dimension_numbers = #tpu.dot_dimension_numbers<[1], [0], [0], [1], [0, 0, 1, 1], [], []>} : vector<128x128xbf16>, vector<128x128xbf16>, vector<128x128xf32> -> vector<128x128xf32>
    %c1_52 = arith.constant 1 : index
    %c0_53 = arith.constant 0 : index
    %c0_54 = arith.constant 0 : index
    %46 = vector.load %arg6[%c1_52, %c0_53, %c0_54] : memref<2x1x128xf32, #tpu.memory_space<vmem>>, vector<1x1x128xf32>
    %47 = vector.shape_cast %46 : vector<1x1x128xf32> to vector<1x128xf32>
    %48 = vector.broadcast %47 : vector<1x128xf32> to vector<128x128xf32>
    %49 = arith.addf %45, %48 : vector<128x128xf32>
    %cst_55 = arith.constant 0.000000e+00 : f32
    %50 = vector.broadcast %cst_55 : f32 to vector<128x128xf32>
    %51 = arith.maximumf %49, %50 : vector<128x128xf32>
    %52 = arith.truncf %51 : vector<128x128xf32> to vector<128x128xbf16>
    %c0_56 = arith.constant 0 : index
    %c0_57 = arith.constant 0 : index
    %c0_58 = arith.constant 0 : index
    %53 = vector.load %arg3[%c0_56, %c0_57, %c0_58] : memref<1x8x128xbf16, #tpu.memory_space<vmem>>, vector<1x8x128xbf16>
    %54 = vector.shape_cast %53 : vector<1x8x128xbf16> to vector<8x128xbf16>
    %cst_59 = arith.constant dense<0.000000e+00> : vector<8x128xf32>
    %55 = tpu.matmul %54, %52, %cst_59 {dimension_numbers = #tpu.dot_dimension_numbers<[1], [0], [0], [1], [0, 0, 1, 1], [], []>} : vector<8x128xbf16>, vector<128x128xbf16>, vector<8x128xf32> -> vector<8x128xf32>
    %c0_60 = arith.constant 0 : index
    %c0_61 = arith.constant 0 : index
    %c0_62 = arith.constant 0 : index
    %56 = vector.load %arg4[%c0_60, %c0_61, %c0_62] : memref<1x8x1xf32, #tpu.memory_space<vmem>>, vector<1x8x1xf32>
    %57 = vector.shape_cast %56 : vector<1x8x1xf32> to vector<8x1xf32>
    %58 = vector.broadcast %57 : vector<8x1xf32> to vector<8x128xf32>
    %59 = arith.mulf %55, %58 : vector<8x128xf32>
    %c0_63 = arith.constant 0 : index
    %c0_64 = arith.constant 0 : index
    %c0_65 = arith.constant 0 : index
    %60 = vector.load %arg7[%c0_63, %c0_64, %c0_65] : memref<1x8x128xf32, #tpu.memory_space<vmem>>, vector<1x8x128xf32>
    %61 = vector.shape_cast %60 : vector<1x8x128xf32> to vector<8x128xf32>
    %62 = vector.shape_cast %59 : vector<8x128xf32> to vector<1x8x128xf32>
    tpu.vector_store %arg7[%c0_63, %c0_64, %c0_65], %62 {strides = array<i32>} : memref<1x8x128xf32, #tpu.memory_space<vmem>>, vector<1x8x128xf32>,
    return
  }
  func.func @transform_0(%arg0: i32) -> (i32, i32, i32) {
    %c0_i32 = arith.constant 0 : i32
    %c0_i32_0 = arith.constant 0 : i32
    %c0_i32_1 = arith.constant 0 : i32
    return %arg0, %c0_i32, %c0_i32_0 : i32, i32, i32
  }
  func.func @transform_1(%arg0: i32) -> (i32, i32, i32) {
    %c0_i32 = arith.constant 0 : i32
    %c0_i32_0 = arith.constant 0 : i32
    %c0_i32_1 = arith.constant 0 : i32
    return %arg0, %c0_i32, %c0_i32_0 : i32, i32, i32
  }
  func.func @transform_2(%arg0: i32) -> (i32, i32, i32) {
    %c0_i32 = arith.constant 0 : i32
    %c0_i32_0 = arith.constant 0 : i32
    %c0_i32_1 = arith.constant 0 : i32
    return %arg0, %c0_i32, %c0_i32_0 : i32, i32, i32
  }
  func.func @transform_3(%arg0: i32) -> (i32, i32, i32) {
    %c0_i32 = arith.constant 0 : i32
    %c0_i32_0 = arith.constant 0 : i32
    %c0_i32_1 = arith.constant 0 : i32
    return %arg0, %c0_i32, %c0_i32_0 : i32, i32, i32
  }
  func.func @transform_4(%arg0: i32) -> (i32, i32, i32) {
    %c0_i32 = arith.constant 0 : i32
    %c0_i32_0 = arith.constant 0 : i32
    %c0_i32_1 = arith.constant 0 : i32
    %c0_i32_2 = arith.constant 0 : i32
    return %c0_i32, %c0_i32_0, %c0_i32_1 : i32, i32, i32
  }
  func.func @transform_5(%arg0: i32) -> (i32, i32, i32) {
    %c0_i32 = arith.constant 0 : i32
    %c0_i32_0 = arith.constant 0 : i32
    %c0_i32_1 = arith.constant 0 : i32
    %c0_i32_2 = arith.constant 0 : i32
    return %c0_i32, %c0_i32_0, %c0_i32_1 : i32, i32, i32
  }
  func.func @transform_6(%arg0: i32) -> (i32, i32, i32) {
    %c0_i32 = arith.constant 0 : i32
    %c0_i32_0 = arith.constant 0 : i32
    %c0_i32_1 = arith.constant 0 : i32
    return %arg0, %c0_i32, %c0_i32_0 : i32, i32, i32
  }
}

</mosaic_0001>

<bundles_post_ra>
// kernel: tpu_custom_call.1
= control target key start
LH: loop header
LB: loop body
LE: loop exit
PB: predicated region body
PF: predicated region fallthrough
CT: control target
= control target key end

     0   :  { %11 = vsyncpa [#allocation4], 0  ;;  %s1671_s0 = inlined_call_operand.vmem [shape: bf16[2,128,16], index: 0, kind: input, shape index: {}]   ;;  %s1672_s1 = inlined_call_operand.vmem [shape: bf16[2,128,128], index: 1, kind: input, shape index: {}]   ;;  %s1673_s2 = inlined_call_operand.vmem [shape: bf16[2,8,128], index: 2, kind: input, shape index: {}]   ;;  %s1674_s3 = inlined_call_operand.vmem [shape: f32[2,8,1], index: 3, kind: input, shape index: {}]   ;;  %s1675_s4 = inlined_call_operand.hbm [shape: bf16[2,128,128], index: 4, kind: input, shape index: {}]   ;;  %s1676_s5 = inlined_call_operand.vmem [shape: f32[2,1,128], index: 5, kind: input, shape index: {}]   ;;  %s1677_s6 = inlined_call_operand.hbm [shape: f32[2,8,128], index: 6, kind: output, shape index: {}]  }
   0x1   :  { %12 = vsyncpa [#allocation5], 0 }
   0x2   :  { %14 = vsyncpa [#allocation5 + $0x1], 0  ;;  %s1493_s21 = smov 0   ;;  %s1495_s22 = smov 0  }
   0x3   :  { %s1497_s23 = smov 0   ;;  %s1499_s24 = smov 0  }
   0x4 LB: > { %s1514_s25 = sadd.s32 4294967295, %s1445_s24   ;;  %s1105_s26 = sadd.s32 4294967294, %s1445_s24   ;;  %s1445_s24 = sphi %s1499_s24, %s1683_s24   ;;  %s1441_s23 = sphi %s1497_s23, %s1682_s23   ;;  %s1437_s22 = sphi %s1495_s22, %s1681_s22   ;;  %s1433_s21 = sphi %s1493_s21, %s1680_s21  }
   0x5   : > { %s1518_s27 = sadd.s32 1, %s1445_s24   ;;  %s173_s28 = sadd.s32 1, %s1441_s23 }
   0x6   : > { %s170_s29 = ssub.s32 %s1445_s24, %s1518_s27  ;;  %p183_p0 = scmp.ne.s32.totalorder %s1441_s23, %s1437_s22 }
   0x7   : > { %p171_p1 = scmp.eq.s32.totalorder %s170_s29, 0  ;;  %p184_p2 = scmp.eq.s32.totalorder %s1514_s25, 1 }
   0x8   : > { %p189_p3 = scmp.ne.s32.totalorder %s1437_s22, %s1433_s21  ;;  %p190_p4 = scmp.eq.s32.totalorder %s1105_s26, 1 }
   0x9   : > { %s1529_s30 = scalar_select %p171_p1, %s1441_s23, %s173_s28  }
   0xa   : > { %p1531_p5 = por %p184_p2, %p183_p0  ;;  %p1535_p6 = por %p190_p4, %p189_p3 }
   0xb   : > { %p1106_p7 = scmp.ge.s32.totalorder %s1445_s24, 1  ;;  %p197_p8 = scmp.lt.s32.totalorder %s1445_s24, 3 }
   0xc   : > { %p1299_p9 = scmp.eq.s32.totalorder %s1514_s25, 0  ;;  %s208_s11 = sshll.u32 %s1675_s4, 4  ;;  %s209_s11 = int_to_ptr.hbm [resolvable:$true] %s208_s11 }
   0xd   : > { %p198_p10 = pnand %p1106_p7, %p197_p8  ;;  %s1447_s12 = smov [#allocation3]  }
   0xe   : > { %s210_s13 = sshll.u32 %s1447_s12, 4  ;;  %s1448_s14 = smov 64   ;;  %s211_s13 = int_to_ptr.vmem [resolvable:$true] %s210_s13 }
   0xf   : > { %p1291_p11 = pneg %p198_p10  ;;  %s1449_s15 = smov 4  }
  0x10   : > { %259 = sbr.rel (%p198_p10) target bundleno = 1128 (0x468), region = 44 }
  0x11   : > { %p1292_p12 = pnand %p1299_p9, %p1291_p11 }
  0x13   : > { %1294 = dma.hbm_to_vmem [thread:$0]  (!%p1292_p12), %s209_s11, 2048, %s211_s13, [#allocation4], %s1448_s14, %s1448_s14, %s1449_s15  }
  0x15   : > { %1424 = dma.done.wait (%p1299_p9), [#allocation4], 2048  }
  0x16   : > { %1426 = vsyncadd (%p1299_p9), [#allocation4], 4294965248  ;;  %p303_p13 = scmp.lt.s32.totalorder %s1514_s25, 1  ;;  %s1450_s9 = smov 16   ;;  %v1453_v4 = vmov 0   ;;  %vm340_vm0 = vcmask 125952  }
  0x17   : > { %s1451_s10 = smov 32   ;;  %s1452_s11 = smov 48   ;;  %322 = vst [vmem:[#allocation2] sm:$0xf] %v1453_v4  ;;  %1345 = vset.pattern.permute.xlu2 %v1453_v4  ;;  %1346 = vset.pattern.permute.xlu0 %v1453_v4  ;;  %vm379_vm1 = vcmask 519552   ;;  %vm353_vm2 = vcmask 257152  }
  0x18   : > { %s1553_s16 = scalar_select %p303_p13, %s1514_s25, 1  ;;  %323 = vst [vmem:[#allocation2 + $0x4] sm:$0xf] %v1453_v4  ;;  %vm366_vm3 = vcmask 388352   ;;  %vm392_vm4 = vcmask 650752   ;;  %vm405_vm5 = vcmask 781952  }
  0x19   : > { %324 = vst [vmem:[#allocation2 + $0x8] sm:$0xf] %v1453_v4  ;;  %s1454_s12 = smov 64   ;;  %s1455_s13 = smov 80   ;;  %vm418_vm6 = vcmask 913152   ;;  %v1276_v41 = vld [vmem:[#allocation3 + $0x38] sm:$0xff] }
  0x1a   : > { %s1251_s17 = sshll.u32 %s1553_s16, 6  ;;  %325 = vst [vmem:[#allocation2 + $0xc] sm:$0xf] %v1453_v4  ;;  %s1456_s14 = smov 96   ;;  %687 = vmatpush.bf16.msra.mxu1 %v1276_v41  ;;  %v1275_v42 = vld [vmem:[#allocation3 + $0x30] sm:$0xff]  ;;  %v1274_v44 = vld [vmem:[#allocation3 + $0x28] sm:$0xff] }
  0x1b   : > { %s1559_s20 = scalar_lea.vmem %s1671_s0, %s1251_s17  ;;  %s1566_s29 = scalar_lea.vmem %s1672_s1, %s1251_s17  ;;  %326 = vst [vmem:[#allocation2 + $0x10] sm:$0xf] %v1453_v4  ;;  %vm431_vm7 = vcmask 1044352   ;;  %v1273_v47 = vld [vmem:[#allocation3 + $0x20] sm:$0xff]  ;;  %v1272_v48 = vld [vmem:[#allocation3 + $0x18] sm:$0xff]  ;;  %v1271_v50 = vld [vmem:[#allocation3 + $0x10] sm:$0xff] }
  0x1c   : > { %v343_v0 = vld [vmem:[%s1559_s20 + $0x8] sm:$0xf]  ;;  %v356_v1 = vld [vmem:[%s1559_s20 + $0x10] sm:$0xf]  ;;  %v369_v2 = vld [vmem:[%s1559_s20 + $0x18] sm:$0xf] }
  0x1d   : > { %347 = vrot.lane.b32.xlu0 %v343_v0, %s1450_s9  ;;  %360 = vrot.lane.b32.xlu1 %v356_v1, %s1451_s10  ;;  %v1268_v3 = vld [vmem:[%s1566_s29 + $0x38] sm:$0xff]  ;;  %v344_v5 = vld [vmem:[%s1559_s20 + $0xc] sm:$0xf]  ;;  %327 = vst [vmem:[#allocation2 + $0x14] sm:$0xf] %v1453_v4  ;;  %s1457_s15 = smov 112  }
  0x1e   : > { %373 = vrot.lane.b32.xlu2 %v369_v2, %s1452_s11  ;;  %562 = vmatpush.bf16.msra.mxu0 %v1268_v3  ;;  %v357_v6 = vld [vmem:[%s1559_s20 + $0x14] sm:$0xf]  ;;  %v338_v8 = vld [vmem:[%s1559_s20] sm:$0xf]  ;;  %v370_v9 = vld [vmem:[%s1559_s20 + $0x1c] sm:$0xf] }
  0x1f   : > { %v1267_v7 = vld [vmem:[%s1566_s29 + $0x30] sm:$0xff]  ;;  %v339_v10 = vld [vmem:[%s1559_s20 + $0x4] sm:$0xf]  ;;  %341 = vst.msk [vmem:[#allocation2] sm:$0xf] %vm340_vm0, %v338_v8  ;;  %v1266_v11 = vld [vmem:[%s1566_s29 + $0x28] sm:$0xff]  ;;  %688 = vmatpush.bf16.msra.mxu1 %v1275_v42 }
  0x20   : > { %342 = vst.msk [vmem:[#allocation2 + $0x4] sm:$0xf] %vm340_vm0, %v339_v10  ;;  %v383_v12 = vld [vmem:[%s1559_s20 + $0x24] sm:$0xf]  ;;  %v382_v13 = vld [vmem:[%s1559_s20 + $0x20] sm:$0xf] }
  0x21   : > { %328 = vst [vmem:[#allocation2 + $0x18] sm:$0xf] %v1453_v4  ;;  %v1265_v14 = vld [vmem:[%s1566_s29 + $0x20] sm:$0xff]  ;;  %v395_v15 = vld [vmem:[%s1559_s20 + $0x28] sm:$0xf]  ;;  %v1264_v16 = vld [vmem:[%s1566_s29 + $0x18] sm:$0xff] }
  0x22   : > { %563 = vmatpush.bf16.msra.mxu0 %v1267_v7  ;;  %329 = vst [vmem:[#allocation2 + $0x1c] sm:$0xf] %v1453_v4  ;;  %v396_v17 = vld [vmem:[%s1559_s20 + $0x2c] sm:$0xf]  ;;  %v408_v18 = vld [vmem:[%s1559_s20 + $0x30] sm:$0xf] }
  0x23   : > { %330 = vst [vmem:[#allocation2 + $0x20] sm:$0xf] %v1453_v4  ;;  %v1263_v19 = vld [vmem:[%s1566_s29 + $0x10] sm:$0xff]  ;;  %v1262_v21 = vld [vmem:[%s1566_s29 + $0x8] sm:$0xff]  ;;  %v1261_v22 = vld [vmem:[%s1566_s29] sm:$0xff]  ;;  %689 = vmatpush.bf16.msra.mxu1 %v1274_v44  ;;  %s1117_s26 = sshll.u32 %s1553_s16, 3 }
  0x24   : > { %331 = vst [vmem:[#allocation2 + $0x24] sm:$0xf] %v1453_v4  ;;  %v409_v20 = vld [vmem:[%s1559_s20 + $0x34] sm:$0xf]  ;;  %v422_v23 = vld [vmem:[%s1559_s20 + $0x3c] sm:$0xf] }
  0x25   : > { %349 = vrot.lane.b32.xlu0 %v344_v5, %s1450_s9  ;;  %362 = vrot.lane.b32.xlu1 %v357_v6, %s1451_s10  ;;  %332 = vst [vmem:[#allocation2 + $0x28] sm:$0xf] %v1453_v4  ;;  %v421_v24 = vld [vmem:[%s1559_s20 + $0x38] sm:$0xf]  ;;  %v1270_v52 = vld [vmem:[#allocation3 + $0x8] sm:$0xff]  ;;  %v1269_v54 = vld [vmem:[#allocation3] sm:$0xff]  ;;  %s320_s9 = scalar_lea.vmem %s1674_s3, %s1117_s26 }
  0x26   : > { %375 = vrot.lane.b32.xlu2 %v370_v9, %s1452_s11  ;;  %564 = vmatpush.bf16.msra.mxu0 %v1266_v11  ;;  %333 = vst [vmem:[#allocation2 + $0x2c] sm:$0xf] %v1453_v4  ;;  %v1347_v10 = vld [vmem:[%s1676_s5] ss:$0 sm:$0xff]  ;;  %s1116_s10 = sshll.u32 %s1553_s16, 2 }
  0x27   : > { %334 = vst [vmem:[#allocation2 + $0x30] sm:$0xf] %v1453_v4  ;;  %v1590_v25 = vld [vmem:[#allocation2] sm:$0xff]  ;;  %690 = vmatpush.bf16.msra.mxu1 %v1273_v47 }
  0x28   : > { %335 = vst [vmem:[#allocation2 + $0x34] sm:$0xf] %v1453_v4 }
  0x29   : > { %336 = vst [vmem:[#allocation2 + $0x38] sm:$0xf] %v1453_v4 }
  0x2a   : > { %565 = vmatpush.bf16.msra.mxu0 %v1265_v14  ;;  %337 = vst [vmem:[#allocation2 + $0x3c] sm:$0xf] %v1453_v4 }
  0x2b   : > { %691 = vmatpush.bf16.msra.mxu1 %v1272_v48 }
  0x2d   : > { %388 = vrot.lane.b32.xlu1 %v383_v12, %s1454_s12  ;;  %386 = vrot.lane.b32.xlu0 %v382_v13, %s1454_s12  ;;  %s1399_s12 = scalar_lea.hbm %s1677_s6, 16 }
  0x2e   : > { %399 = vrot.lane.b32.xlu2 %v395_v15, %s1455_s13  ;;  %566 = vmatpush.bf16.msra.mxu0 %v1264_v16 }
  0x2f   : > { %692 = vmatpush.bf16.msra.mxu1 %v1271_v50 }
  0x32   : > { %567 = vmatpush.bf16.msra.mxu0 %v1263_v19 }
  0x33   : > { %693 = vmatpush.bf16.msra.mxu1 %v1270_v52 }
  0x35   : > { %401 = vrot.lane.b32.xlu0 %v396_v17, %s1455_s13  ;;  %412 = vrot.lane.b32.xlu1 %v408_v18, %s1456_s14  ;;  %s316_s13 = scalar_lea.vmem %s1673_s2, %s1116_s10 }
  0x36   : > { %414 = vrot.lane.b32.xlu2 %v409_v20, %s1456_s14  ;;  %568 = vmatpush.bf16.msra.mxu0 %v1262_v21  ;;  %s300_s14 = sand.u32 1, %s1437_s22  }
  0x37   : > { %694 = vmatpush.bf16.msra.mxu1 %v1269_v54  ;;  %s1111_s17 = sshll.u32 %s300_s14, 3  ;;  %s983_s29 = scalar_lea.sflag [#allocation5], %s300_s14 }
  0x38   : > { %s302_s26 = scalar_lea.vmem [#allocation6], %s1111_s17 }
  0x39   : > { %s995_s28 = sshll.u32 %s302_s26, 4  ;;  %s996_s28 = int_to_ptr.vmem [resolvable:$true] %s995_s28 }
  0x3a   : > { %569 = vmatpush.bf16.msra.mxu0 %v1261_v22 }
  0x3d   : > { %427 = vrot.lane.b32.xlu1 %v422_v23, %s1457_s15  ;;  %425 = vrot.lane.b32.xlu0 %v421_v24, %s1457_s15  ;;  %s1248_s15 = sshll.u32 %s1514_s25, 3 }
  0x3e   : > { %570 = vmatmul.bf16.vlgmr.msra.gmra.mxu0 %v1590_v25  ;;  %s993_s20 = scalar_lea.hbm %s1677_s6, %s1248_s15 }
  0x3f   : > { %s997_s16 = sshll.u32 %s993_s20, 4  ;;  %s998_s16 = int_to_ptr.hbm [resolvable:$true] %s997_s16 }
  0x78   : > { %v374_v26 = vpop.permute.xlu2 %373 }
  0x79   : > { %380 = vst.msk [vmem:[#allocation2 + $0x18] sm:$0xf] %vm379_vm1, %v374_v26 }
  0x80   : > { %v376_v27 = vpop.permute.xlu2 %375 }
  0x81   : > { %381 = vst.msk [vmem:[#allocation2 + $0x1c] sm:$0xf] %vm379_vm1, %v376_v27 }
  0x88   : > { %v400_v36 = vpop.permute.xlu2 %399  ;;  %v1599_v38 = vld [vmem:[#allocation2 + $0x18] sm:$0xff] }
  0x89   : > { %406 = vst.msk [vmem:[#allocation2 + $0x28] sm:$0xf] %vm405_vm5, %v400_v36 }
  0x8f   : > { %v348_v28 = vpop.permute.xlu0 %347  ;;  %v361_v29 = vpop.permute.xlu1 %360 }
  0x90   : > { %354 = vst.msk [vmem:[#allocation2 + $0x8] sm:$0xf] %vm353_vm2, %v348_v28  ;;  %v415_v39 = vpop.permute.xlu2 %414 }
  0x91   : > { %367 = vst.msk [vmem:[#allocation2 + $0x10] sm:$0xf] %vm366_vm3, %v361_v29 }
  0x92   : > { %420 = vst.msk [vmem:[#allocation2 + $0x34] sm:$0xf] %vm418_vm6, %v415_v39 }
  0x97   : > { %v350_v30 = vpop.permute.xlu0 %349  ;;  %v363_v31 = vpop.permute.xlu1 %362 }
  0x98   : > { %355 = vst.msk [vmem:[#allocation2 + $0xc] sm:$0xf] %vm353_vm2, %v350_v30 }
  0x99   : > { %368 = vst.msk [vmem:[#allocation2 + $0x14] sm:$0xf] %vm366_vm3, %v363_v31 }
  0x9f   : > { %v1593_v32 = vld [vmem:[#allocation2 + $0x8] sm:$0xff]  ;;  %v389_v33 = vpop.permute.xlu1 %388  ;;  %v387_v34 = vpop.permute.xlu0 %386 }
  0xa0   : > { %575 = vmatmul.bf16.gmra.mxu0 %v1593_v32  ;;  %394 = vst.msk [vmem:[#allocation2 + $0x24] sm:$0xf] %vm392_vm4, %v389_v33  ;;  %v1596_v35 = vld [vmem:[#allocation2 + $0x10] sm:$0xff] }
  0xa1   : > { %393 = vst.msk [vmem:[#allocation2 + $0x20] sm:$0xf] %vm392_vm4, %v387_v34 }
  0xa7   : > { %v402_v37 = vpop.permute.xlu0 %401  ;;  %v413_v40 = vpop.permute.xlu1 %412 }
  0xa8   : > { %407 = vst.msk [vmem:[#allocation2 + $0x2c] sm:$0xf] %vm405_vm5, %v402_v37  ;;  %v1602_v43 = vld [vmem:[#allocation2 + $0x20] sm:$0xff] }
  0xa9   : > { %419 = vst.msk [vmem:[#allocation2 + $0x30] sm:$0xf] %vm418_vm6, %v413_v40 }
  0xaf   : > { %v428_v45 = vpop.permute.xlu1 %427  ;;  %v426_v46 = vpop.permute.xlu0 %425  ;;  %v1605_v51 = vld [vmem:[#allocation2 + $0x28] sm:$0xff] }
  0xb0   : > { %580 = vmatmul.bf16.gmra.mxu0 %v1596_v35  ;;  %433 = vst.msk [vmem:[#allocation2 + $0x3c] sm:$0xf] %vm431_vm7, %v428_v45  ;;  %v1608_v56 = vld [vmem:[#allocation2 + $0x30] sm:$0xff] }
  0xb1   : > { %432 = vst.msk [vmem:[#allocation2 + $0x38] sm:$0xf] %vm431_vm7, %v426_v46 }
  0xb8   : > { %v1611_v57 = vld [vmem:[#allocation2 + $0x38] sm:$0xff] }
  0xbb   : > { %v571_v49 = vpop.f32.mrf.mxu0 }
  0xc0   : > { %585 = vmatmul.bf16.gmra.mxu0 %v1599_v38 }
  0xc3   : > { %v573_v53 = vpop.f32.mrf.mxu0 }
  0xc4   : > { %v611_v55 = vpack.c.bf16 %v573_v53, %v571_v49 }
  0xc6   : > { %695 = vmatmul.bf16.vlgmr.msra.gmra.mxu1 %v611_v55 }
  0xd0   : > { %590 = vmatmul.bf16.gmra.mxu0 %v1602_v43 }
  0xe0   : > { %595 = vmatmul.bf16.gmra.mxu0 %v1605_v51 }
  0xf0   : > { %600 = vmatmul.bf16.gmra.mxu0 %v1608_v56 }
 0x100   : > { %605 = vmatmul.bf16.gmra.mxu0 %v1611_v57 }
 0x11d   : > { %v576_v58 = vpop.f32.mrf.mxu0 }
 0x125   : > { %v578_v59 = vpop.f32.mrf.mxu0 }
 0x126   : > { %v612_v60 = vpack.c.bf16 %v578_v59, %v576_v58 }
 0x128   : > { %700 = vmatmul.bf16.gmra.mxu1 %v612_v60 }
 0x12d   : > { %v581_v61 = vpop.f32.mrf.mxu0 }
 0x135   : > { %v583_v62 = vpop.f32.mrf.mxu0 }
 0x136   : > { %v613_v63 = vpack.c.bf16 %v583_v62, %v581_v61 }
 0x138   : > { %705 = vmatmul.bf16.gmra.mxu1 %v613_v63 }
 0x13d   : > { %v586_v0 = vpop.f32.mrf.mxu0 }
 0x143   : > { %v696_v8 = vpop.f32.mrf.mxu1 }
 0x144   : > { %v697_v11 = vadd.f32 %v1347_v10, %v696_v8 }
 0x145   : > { %v588_v1 = vpop.f32.mrf.mxu0 }
 0x146   : > { %v614_v2 = vpack.c.bf16 %v588_v1, %v586_v0  ;;  %v736_v14 = vmax.f32 %v697_v11, 0.0 }
 0x148   : > { %710 = vmatmul.bf16.gmra.mxu1 %v614_v2 }
 0x14b   : > { %v698_v13 = vpop.f32.mrf.mxu1 }
 0x14c   : > { %v699_v15 = vadd.f32 %v1347_v10, %v698_v13 }
 0x14d   : > { %v591_v3 = vpop.f32.mrf.mxu0 }
 0x14e   : > { %v737_v16 = vmax.f32 %v699_v15, 0.0 }
 0x150   : > { %v1617_v17 = vpack.c.bf16 %v737_v16, %v736_v14 }
 0x155   : > { %v593_v4 = vpop.f32.mrf.mxu0 }
 0x156   : > { %v615_v5 = vpack.c.bf16 %v593_v4, %v591_v3 }
 0x158   : > { %715 = vmatmul.bf16.gmra.mxu1 %v615_v5 }
 0x15d   : > { %v596_v6 = vpop.f32.mrf.mxu0 }
 0x165   : > { %v598_v7 = vpop.f32.mrf.mxu0 }
 0x166   : > { %v616_v9 = vpack.c.bf16 %v598_v7, %v596_v6 }
 0x168   : > { %720 = vmatmul.bf16.gmra.mxu1 %v616_v9 }
 0x16d   : > { %v601_v12 = vpop.f32.mrf.mxu0 }
 0x175   : > { %v603_v18 = vpop.f32.mrf.mxu0 }
 0x176   : > { %v617_v19 = vpack.c.bf16 %v603_v18, %v601_v12  ;;  %v1283_v18 = vld [vmem:[#allocation3 + $0x70] sm:$0xff] }
 0x178   : > { %725 = vmatmul.bf16.gmra.mxu1 %v617_v19  ;;  %v1282_v19 = vld [vmem:[#allocation3 + $0x68] sm:$0xff] }
 0x17d   : > { %v606_v20 = vpop.f32.mrf.mxu0 }
 0x185   : > { %v608_v21 = vpop.f32.mrf.mxu0 }
 0x186   : > { %v618_v22 = vpack.c.bf16 %v608_v21, %v606_v20  ;;  %v1281_v20 = vld [vmem:[#allocation3 + $0x60] sm:$0xff] }
 0x188   : > { %730 = vmatmul.bf16.gmra.mxu1 %v618_v22 }
 0x1a5   : > { %v701_v23 = vpop.f32.mrf.mxu1 }
 0x1a6   : > { %v702_v24 = vadd.f32 %v1347_v10, %v701_v23 }
 0x1a8   : > { %v738_v28 = vmax.f32 %v702_v24, 0.0 }
 0x1ad   : > { %v703_v26 = vpop.f32.mrf.mxu1 }
 0x1ae   : > { %v704_v27 = vadd.f32 %v1347_v10, %v703_v26 }
 0x1b0   : > { %v739_v29 = vmax.f32 %v704_v27, 0.0 }
 0x1b2   : > { %v753_v30 = vpack.c.bf16 %v739_v29, %v738_v28 }
 0x1b5   : > { %v706_v31 = vpop.f32.mrf.mxu1 }
 0x1b6   : > { %v707_v33 = vadd.f32 %v1347_v10, %v706_v31 }
 0x1b8   : > { %v740_v37 = vmax.f32 %v707_v33, 0.0 }
 0x1bd   : > { %v708_v34 = vpop.f32.mrf.mxu1 }
 0x1be   : > { %v709_v36 = vadd.f32 %v1347_v10, %v708_v34 }
 0x1c0   : > { %v741_v39 = vmax.f32 %v709_v36, 0.0 }
 0x1c2   : > { %v754_v40 = vpack.c.bf16 %v741_v39, %v740_v37 }
 0x1c5   : > { %v711_v41 = vpop.f32.mrf.mxu1 }
 0x1c6   : > { %v712_v42 = vadd.f32 %v1347_v10, %v711_v41 }
 0x1c8   : > { %v742_v46 = vmax.f32 %v712_v42, 0.0 }
 0x1cd   : > { %v713_v44 = vpop.f32.mrf.mxu1 }
 0x1ce   : > { %v714_v45 = vadd.f32 %v1347_v10, %v713_v44 }
 0x1d0   : > { %v743_v47 = vmax.f32 %v714_v45, 0.0 }
 0x1d2   : > { %v755_v48 = vpack.c.bf16 %v743_v47, %v742_v46  ;;  %v1348_v46 = vld [vmem:[%s1676_s5 + $0x1] ss:$0 sm:$0xff] }
 0x1d5   : > { %v716_v49 = vpop.f32.mrf.mxu1 }
 0x1d6   : > { %v717_v11 = vadd.f32 %v1347_v10, %v716_v49 }
 0x1d8   : > { %v744_v15 = vmax.f32 %v717_v11, 0.0 }
 0x1dd   : > { %v718_v50 = vpop.f32.mrf.mxu1 }
 0x1de   : > { %v719_v7 = vadd.f32 %v1347_v10, %v718_v50 }
 0x1e0   : > { %v745_v13 = vmax.f32 %v719_v7, 0.0 }
 0x1e2   : > { %v756_v16 = vpack.c.bf16 %v745_v13, %v744_v15 }
 0x1e5   : > { %v721_v52 = vpop.f32.mrf.mxu1 }
 0x1e6   : > { %v722_v5 = vadd.f32 %v1347_v10, %v721_v52 }
 0x1e8   : > { %v746_v12 = vmax.f32 %v722_v5, 0.0 }
 0x1ed   : > { %v723_v53 = vpop.f32.mrf.mxu1 }
 0x1ee   : > { %v724_v2 = vadd.f32 %v1347_v10, %v723_v53 }
 0x1f0   : > { %v747_v8 = vmax.f32 %v724_v2, 0.0 }
 0x1f2   : > { %v757_v14 = vpack.c.bf16 %v747_v8, %v746_v12 }
 0x1f5   : > { %v726_v54 = vpop.f32.mrf.mxu1 }
 0x1f6   : > { %v727_v63 = vadd.f32 %v1347_v10, %v726_v54 }
 0x1f8   : > { %v748_v6 = vmax.f32 %v727_v63, 0.0 }
 0x1fd   : > { %v728_v55 = vpop.f32.mrf.mxu1 }
 0x1fe   : > { %v729_v61 = vadd.f32 %v1347_v10, %v728_v55 }
 0x200   : > { %v749_v3 = vmax.f32 %v729_v61, 0.0 }
 0x202   : > { %v758_v9 = vpack.c.bf16 %v749_v3, %v748_v6 }
 0x205   : > { %v731_v58 = vpop.f32.mrf.mxu1 }
 0x206   : > { %v732_v59 = vadd.f32 %v1347_v10, %v731_v58 }
 0x208   : > { %v750_v0 = vmax.f32 %v732_v59, 0.0 }
 0x20d   : > { %v733_v60 = vpop.f32.mrf.mxu1 }
 0x20e   : > { %v734_v62 = vadd.f32 %v1347_v10, %v733_v60  ;;  %v1284_v10 = vld [vmem:[#allocation3 + $0x78] sm:$0xff] }
 0x20f   : > { %887 = vmatpush.bf16.msra.mxu3 %v1284_v10 }
 0x210   : > { %v751_v1 = vmax.f32 %v734_v62, 0.0 }
 0x212   : > { %v759_v4 = vpack.c.bf16 %v751_v1, %v750_v0 }
 0x213   : > { %888 = vmatpush.bf16.msra.mxu3 %v1283_v18 }
 0x214   : > { %760 = vmatpush.bf16.msra.mxu2 %v759_v4 }
 0x217   : > { %889 = vmatpush.bf16.msra.mxu3 %v1282_v19 }
 0x218   : > { %761 = vmatpush.bf16.msra.mxu2 %v758_v9 }
 0x21b   : > { %890 = vmatpush.bf16.msra.mxu3 %v1281_v20 }
 0x21c   : > { %762 = vmatpush.bf16.msra.mxu2 %v757_v14 }
 0x220   : > { %763 = vmatpush.bf16.msra.mxu2 %v756_v16 }
 0x224   : > { %764 = vmatpush.bf16.msra.mxu2 %v755_v48 }
 0x228   : > { %765 = vmatpush.bf16.msra.mxu2 %v754_v40 }
 0x22c   : > { %766 = vmatpush.bf16.msra.mxu2 %v753_v30 }
 0x230   : > { %767 = vmatpush.bf16.msra.mxu2 %v1617_v17  ;;  %v1280_v17 = vld [vmem:[#allocation3 + $0x58] sm:$0xff] }
 0x231   : > { %891 = vmatpush.bf16.msra.mxu3 %v1280_v17 }
 0x233   : > { %768 = vmatmul.bf16.vlgmr.msra.gmra.mxu2 %v1590_v25  ;;  %v1279_v25 = vld [vmem:[#allocation3 + $0x50] sm:$0xff] }
 0x235   : > { %892 = vmatpush.bf16.msra.mxu3 %v1279_v25 }
 0x243   : > { %773 = vmatmul.bf16.gmra.mxu2 %v1593_v32  ;;  %v1278_v32 = vld [vmem:[#allocation3 + $0x48] sm:$0xff] }
 0x244   : > { %893 = vmatpush.bf16.msra.mxu3 %v1278_v32 }
 0x253   : > { %778 = vmatmul.bf16.gmra.mxu2 %v1596_v35  ;;  %v1277_v35 = vld [vmem:[#allocation3 + $0x40] sm:$0xff] }
 0x254   : > { %894 = vmatpush.bf16.msra.mxu3 %v1277_v35 }
 0x263   : > { %783 = vmatmul.bf16.gmra.mxu2 %v1599_v38 }
 0x273   : > { %788 = vmatmul.bf16.gmra.mxu2 %v1602_v43 }
 0x283   : > { %793 = vmatmul.bf16.gmra.mxu2 %v1605_v51 }
 0x293   : > { %798 = vmatmul.bf16.gmra.mxu2 %v1608_v56 }
 0x2a3   : > { %803 = vmatmul.bf16.gmra.mxu2 %v1611_v57 }
 0x2b6   : > { %v769_v38 = vpop.f32.mrf.mxu2 }
 0x2be   : > { %v771_v43 = vpop.f32.mrf.mxu2 }
 0x2bf   : > { %v809_v51 = vpack.c.bf16 %v771_v43, %v769_v38 }
 0x2c1   : > { %895 = vmatmul.bf16.vlgmr.msra.gmra.mxu3 %v809_v51 }
 0x2c6   : > { %v774_v21 = vpop.f32.mrf.mxu2 }
 0x2ce   : > { %v776_v22 = vpop.f32.mrf.mxu2 }
 0x2cf   : > { %v810_v23 = vpack.c.bf16 %v776_v22, %v774_v21 }
 0x2d1   : > { %900 = vmatmul.bf16.gmra.mxu3 %v810_v23 }
 0x2d6   : > { %v779_v24 = vpop.f32.mrf.mxu2 }
 0x2de   : > { %v781_v26 = vpop.f32.mrf.mxu2 }
 0x2df   : > { %v811_v27 = vpack.c.bf16 %v781_v26, %v779_v24  ;;  %v974_v24 = vld [vmem:[%s320_s9] sm:$0xff]  ;;  %s1393_s9 = sshra.s32 %s998_s16, 4  ;;  %s1394_s9 = int_to_ptr.hbm [resolvable:$true] %s1393_s9 }
 0x2e0   : > { %977 = vperm.xlu2 %1345, %v974_v24   ;;  %s1395_s10 = scalar_lea.hbm %s1394_s9, 8  ;;  %p1400_p3 = scmp.lt.s32.totalorder %s1394_s9, %s1677_s6 }
 0x2e1   : > { %905 = vmatmul.bf16.gmra.mxu3 %v811_v27  ;;  %p1396_p0 = scmp.ne.s32.totalorder %s1394_s9, %s1395_s10  ;;  %p1401_p4 = scmp.lt.s32.totalorder %s1399_s12, %s1395_s10 }
 0x2e3   : > { %p1397_p1 = pnand %p1396_p0, %p1531_p5  ;;  %p1402_p7 = por %p1401_p4, %p1400_p3 }
 0x2e5   : > { %p1398_p2 = pneg %p1397_p1 }
 0x2e6   : > { %v784_v56 = vpop.f32.mrf.mxu2 }
 0x2e7   : > { %p1403_p8 = pnand %p1402_p7, %p1398_p2 }
 0x2ee   : > { %v786_v28 = vpop.f32.mrf.mxu2 }
 0x2ef   : > { %v812_v29 = vpack.c.bf16 %v786_v28, %v784_v56 }
 0x2f1   : > { %910 = vmatmul.bf16.gmra.mxu3 %v812_v29 }
 0x2f6   : > { %v789_v30 = vpop.f32.mrf.mxu2 }
 0x2fe   : > { %v791_v31 = vpop.f32.mrf.mxu2 }
 0x2ff   : > { %v813_v33 = vpack.c.bf16 %v791_v31, %v789_v30 }
 0x301   : > { %915 = vmatmul.bf16.gmra.mxu3 %v813_v33 }
 0x306   : > { %v794_v57 = vpop.f32.mrf.mxu2 }
 0x30e   : > { %v796_v34 = vpop.f32.mrf.mxu2 }
 0x30f   : > { %v814_v36 = vpack.c.bf16 %v796_v34, %v794_v57 }
 0x311   : > { %920 = vmatmul.bf16.gmra.mxu3 %v814_v36 }
 0x316   : > { %v799_v37 = vpop.f32.mrf.mxu2 }
 0x31e   : > { %v801_v39 = vpop.f32.mrf.mxu2 }
 0x31f   : > { %v815_v40 = vpack.c.bf16 %v801_v39, %v799_v37  ;;  %v960_v37 = vld [vmem:[%s316_s13] sm:$0xf] }
 0x321   : > { %925 = vmatmul.bf16.gmra.mxu3 %v815_v40 }
 0x326   : > { %v804_v41 = vpop.f32.mrf.mxu2 }
 0x32e   : > { %v806_v42 = vpop.f32.mrf.mxu2 }
 0x32f   : > { %v816_v44 = vpack.c.bf16 %v806_v42, %v804_v41 }
 0x331   : > { %930 = vmatmul.bf16.gmra.mxu3 %v816_v44 }
 0x33a   : > { %v978_v39 = vpop.permute.xlu2 %977 }
 0x344   : > { %v896_v45 = vpop.f32.mrf.mxu3 }
 0x345   : > { %v897_v47 = vadd.f32 %v1348_v46, %v896_v45 }
 0x347   : > { %v936_v50 = vmax.f32 %v897_v47, 0.0 }
 0x34c   : > { %v898_v48 = vpop.f32.mrf.mxu3 }
 0x34d   : > { %v899_v49 = vadd.f32 %v1348_v46, %v898_v48 }
 0x34f   : > { %v937_v52 = vmax.f32 %v899_v49, 0.0 }
 0x351   : > { %v952_v53 = vpack.c.bf16 %v937_v52, %v936_v50 }
 0x354   : > { %v901_v54 = vpop.f32.mrf.mxu3 }
 0x355   : > { %v902_v55 = vadd.f32 %v1348_v46, %v901_v54 }
 0x357   : > { %v938_v60 = vmax.f32 %v902_v55, 0.0 }
 0x35c   : > { %v903_v58 = vpop.f32.mrf.mxu3 }
 0x35d   : > { %v904_v59 = vadd.f32 %v1348_v46, %v903_v58 }
 0x35f   : > { %v939_v61 = vmax.f32 %v904_v59, 0.0 }
 0x361   : > { %v953_v62 = vpack.c.bf16 %v939_v61, %v938_v60 }
 0x364   : > { %v906_v63 = vpop.f32.mrf.mxu3 }
 0x365   : > { %v907_v0 = vadd.f32 %v1348_v46, %v906_v63 }
 0x367   : > { %v940_v3 = vmax.f32 %v907_v0, 0.0 }
 0x36c   : > { %v908_v1 = vpop.f32.mrf.mxu3 }
 0x36d   : > { %v909_v2 = vadd.f32 %v1348_v46, %v908_v1 }
 0x36f   : > { %v941_v4 = vmax.f32 %v909_v2, 0.0 }
 0x371   : > { %v954_v5 = vpack.c.bf16 %v941_v4, %v940_v3 }
 0x374   : > { %v911_v6 = vpop.f32.mrf.mxu3 }
 0x375   : > { %v912_v7 = vadd.f32 %v1348_v46, %v911_v6 }
 0x377   : > { %v942_v11 = vmax.f32 %v912_v7, 0.0 }
 0x37c   : > { %v913_v8 = vpop.f32.mrf.mxu3 }
 0x37d   : > { %v914_v9 = vadd.f32 %v1348_v46, %v913_v8 }
 0x37f   : > { %v943_v12 = vmax.f32 %v914_v9, 0.0 }
 0x381   : > { %v955_v13 = vpack.c.bf16 %v943_v12, %v942_v11 }
 0x384   : > { %v916_v14 = vpop.f32.mrf.mxu3 }
 0x385   : > { %v917_v30 = vadd.f32 %v1348_v46, %v916_v14 }
 0x387   : > { %v944_v34 = vmax.f32 %v917_v30, 0.0 }
 0x38c   : > { %v918_v15 = vpop.f32.mrf.mxu3 }
 0x38d   : > { %v919_v56 = vadd.f32 %v1348_v46, %v918_v15 }
 0x38f   : > { %v945_v33 = vmax.f32 %v919_v56, 0.0 }
 0x391   : > { %v956_v36 = vpack.c.bf16 %v945_v33, %v944_v34 }
 0x394   : > { %v921_v16 = vpop.f32.mrf.mxu3 }
 0x395   : > { %v922_v26 = vadd.f32 %v1348_v46, %v921_v16 }
 0x397   : > { %v946_v31 = vmax.f32 %v922_v26, 0.0 }
 0x39c   : > { %v923_v10 = vpop.f32.mrf.mxu3 }
 0x39d   : > { %v924_v21 = vadd.f32 %v1348_v46, %v923_v10 }
 0x39f   : > { %v947_v28 = vmax.f32 %v924_v21, 0.0 }
 0x3a1   : > { %v957_v57 = vpack.c.bf16 %v947_v28, %v946_v31 }
 0x3a4   : > { %v926_v18 = vpop.f32.mrf.mxu3 }
 0x3a5   : > { %v927_v38 = vadd.f32 %v1348_v46, %v926_v18 }
 0x3a7   : > { %v948_v27 = vmax.f32 %v927_v38, 0.0 }
 0x3ac   : > { %v928_v19 = vpop.f32.mrf.mxu3 }
 0x3ad   : > { %v929_v32 = vadd.f32 %v1348_v46, %v928_v19 }
 0x3af   : > { %v949_v22 = vmax.f32 %v929_v32, 0.0 }
 0x3b1   : > { %v958_v29 = vpack.c.bf16 %v949_v22, %v948_v27 }
 0x3b4   : > { %v931_v20 = vpop.f32.mrf.mxu3 }
 0x3b5   : > { %v932_v17 = vadd.f32 %v1348_v46, %v931_v20 }
 0x3b7   : > { %v950_v43 = vmax.f32 %v932_v17, 0.0 }
 0x3bc   : > { %v933_v25 = vpop.f32.mrf.mxu3 }
 0x3bd   : > { %v934_v35 = vadd.f32 %v1348_v46, %v933_v25 }
 0x3bf   : > { %v951_v51 = vmax.f32 %v934_v35, 0.0 }
 0x3c1   : > { %v959_v23 = vpack.c.bf16 %v951_v51, %v950_v43 }
 0x3c3   : > { %961 = vmatpush.bf16.msrb.mxu0 %v959_v23 }
 0x3c7   : > { %962 = vmatpush.bf16.msrb.mxu0 %v958_v29 }
 0x3cb   : > { %963 = vmatpush.bf16.msrb.mxu0 %v957_v57 }
 0x3cf   : > { %964 = vmatpush.bf16.msrb.mxu0 %v956_v36 }
 0x3d3   : > { %965 = vmatpush.bf16.msrb.mxu0 %v955_v13 }
 0x3d7   : > { %966 = vmatpush.bf16.msrb.mxu0 %v954_v5 }
 0x3db   : > { %967 = vmatpush.bf16.msrb.mxu0 %v953_v62 }
 0x3df   : > { %968 = vmatpush.bf16.msrb.mxu0 %v952_v53 }
 0x3e2   : > { %969 = vmatmul.bf16.vlgmr.msrb.gmra.mxu0 %v960_v37 }
 0x45f   : > { %v970_v40 = vpop.f32.mrf.mxu0 }
 0x460   : > { %v980_v41 = vmul.f32 %v978_v39, %v970_v40 }
 0x462   : > { %981 = vst [vmem:[%s302_s26] sm:$0xff] %v980_v41 }
 0x463   : > { %1406 = shalt.err (!%p1403_p8)
}
 0x464   : > { %1289 = dma.vmem_to_hbm [thread:$0]  (%p1531_p5), %s996_s28, 128, %s998_s16, %s983_s29  }
 0x467   : > { %v972_v42 = vpop.f32.mrf.mxu0 }
 0x468 PF: > { %p1301_p9 = scmp.ge.s32.totalorder %s1445_s24, 2  ;;  %s1009_s14 = sand.u32 1, %s1433_s21  }
 0x469   : > { %s1010_s17 = scalar_lea.sflag [#allocation5], %s1009_s14 }
 0x46a   : > { %p1296_p10 = pnand %p1301_p9, %p1535_p6 }
 0x46c   : > { %p1297_p11 = pneg %p1296_p10 }
 0x46e   : > { %1428 = dma.done.wait (%p1297_p11), %s1010_s17, 128  }
 0x46f   : > { %1430 = vsyncadd (%p1297_p11), %s1010_s17, 4294967168  ;;  %p17_p12 = scmp.ge.s32.totalorder %s1518_s27, 4   ;;  %s1680_s21 = smov %s1437_s22 }
 0x470   : > { %s1681_s22 = smov %s1441_s23  ;;  %s1682_s23 = smov %s1529_s30 }
 0x471   : > { %s1683_s24 = smov %s1518_s27  ;;  %19 = sbr.rel (!%p17_p12) target bundleno = 4 (0x4), region = 95 }
 0x476   :  { %1016 = vsyncpa [#allocation4], 1 }
 0x477   :  { %1018 = vsyncpa [#allocation4 + $0x1], 1 }
 0x478   :  { %1019 = vsyncpa [#allocation5], 1 }
 0x479   :  { %1021 = vsyncpa [#allocation5 + $0x1], 1 }

</bundles_post_ra>
